<compile_context>
chip_gen: v6e
topology: v6e:2x2x1
jax: 0.10.0
libtpu: 0.0.40
codegen_flags: <defaults>
</compile_context>

<pallas_src>
import functools

import jax
import jax.numpy as jnp
from jax.experimental import pallas as pl
from jax.experimental.pallas import tpu as pltpu


def _conv4rot_kernel(x_ref, w_ref, m_ref, o_ref, rhs_ref, *, H, W, KH, KW, C_in):
    """One grid step = one batch element; all 4 weight rotations fused.

    x_ref:   (C_in, Lf)          H-padded input, (H, W) flattened onto the lane axis,
                                 plus KW//2 zero lanes at each end.
    w_ref:   (R, KH*KW*C_in)     fused weights; rows r = c_out*4 + rotation,
                                 columns tap-major: (kh*KW + kw)*C_in + c.
    m_ref:   (KW, 1, H*W)        0/1 column-validity masks for horizontal taps.
    o_ref:   (R, H*W)            lane-dense output tile.
    rhs_ref: (KH*KW*C_in, H*W)   VMEM scratch: fused im2col RHS, rebuilt each step.
    """
    HW = H * W
    pw = KW // 2
    x = x_ref[...]                                     # (C_in, Lf)

    # Build the fused RHS once per step: KH*KW contiguous lane slices, masked where
    # the flat slice wraps into the adjacent row, stacked on the sublane axis.
    for kh in range(KH):
        for kw in range(KW):
            start = kh * W + kw                        # static lane offset
            patch = x[:, start:start + HW]             # (C_in, HW) contiguous slice
            if kw != pw:
                patch = patch * m_ref[kw]              # (C_in, HW) * (1, HW)
            row0 = (kh * KW + kw) * C_in
            rhs_ref[row0:row0 + C_in, :] = patch

    # One MXU matmul: (R, K) @ (K, HW) with K = KH*KW*C_in, f32 accumulate.
    out = jax.lax.dot_general(
        w_ref[...], rhs_ref[...],
        dimension_numbers=(((1,), (0,)), ((), ())),
        preferred_element_type=jnp.float32)
    o_ref[...] = out.astype(o_ref.dtype)


def translation_layer_forward(x_nchw, weight_oihw):
    """x_nchw: (N, C_in, H, W), weight_oihw: (C_out, C_in, KH, KW).

    Returns (N, C_out, 4, H, W) matching the PyTorch module.
    """
    N, C_in, H, W = x_nchw.shape
    C_out, C_in_w, KH, KW = weight_oihw.shape
    assert C_in == C_in_w
    assert KH % 2 == 1 and KW % 2 == 1, "padding='same' implemented for odd kernels"
    ph, pw = KH // 2, KW // 2
    HW = H * W
    R = C_out * 4                      # output rows: c_out-major, rotation-minor
    K_total = KH * KW * C_in           # fused contraction size
    Hp = H + 2 * ph
    Lf = Hp * W + 2 * pw               # flattened, padded lane length

    # --- weights: 4 rotations stacked on the output-row axis, flattened lane-dense ---
    # torch.rot90(w, i, [2, 3]) == jnp.rot90(w, k=i, axes=(2, 3))
    w_rots = jnp.stack([jnp.rot90(weight_oihw, k=i, axes=(2, 3)) for i in range(4)],
                       axis=1)                                   # (C_out, 4, C_in, KH, KW)
    w_rr = w_rots.reshape(R, C_in, KH, KW)                       # r = c_out*4 + rotation
    w_flat = jnp.transpose(w_rr, (0, 2, 3, 1)).reshape(R, K_total)   # (R, KH*KW*C_in)

    # --- input: pad H, flatten (H, W) onto lanes, pad pw lanes each end --------------
    x_padh = jnp.pad(x_nchw, ((0, 0), (0, 0), (ph, ph), (0, 0)))        # (N, C_in, Hp, W)
    x_flat = jnp.pad(x_padh.reshape(N, C_in, Hp * W),
                     ((0, 0), (0, 0), (pw, pw)))                        # (N, C_in, Lf)

    # --- per-kw 0/1 column-validity masks (tiny, constant, compute dtype) ------------
    col = jnp.tile(jnp.arange(W, dtype=jnp.int32), H)                   # (HW,)
    masks = jnp.stack(
        [((col + (kw - pw) >= 0) & (col + (kw - pw) < W)).astype(x_nchw.dtype)
         for kw in range(KW)], axis=0).reshape(KW, 1, HW)               # (KW, 1, HW)

    kernel = functools.partial(_conv4rot_kernel, H=H, W=W, KH=KH, KW=KW, C_in=C_in)

    itemsize = jnp.dtype(x_nchw.dtype).itemsize
    flops = 2 * N * R * K_total * HW
    bytes_accessed = (x_flat.size + w_flat.size + masks.size + N * R * HW) * itemsize

    out = pl.pallas_call(
        kernel,
        out_shape=jax.ShapeDtypeStruct((N, R, HW), x_nchw.dtype),
        grid_spec=pltpu.PrefetchScalarGridSpec(
            num_scalar_prefetch=0,
            grid=(N,),                                   # one step per batch element
            in_specs=[
                pl.BlockSpec((pl.Squeezed(), C_in, Lf), lambda b: (b, 0, 0)),
                pl.BlockSpec((R, K_total), lambda b: (0, 0)),
                pl.BlockSpec((KW, 1, HW), lambda b: (0, 0, 0)),
            ],
            out_specs=pl.BlockSpec((pl.Squeezed(), R, HW), lambda b: (b, 0, 0)),
            scratch_shapes=[pltpu.VMEM((K_total, HW), x_nchw.dtype)],
        ),
        compiler_params=pltpu.CompilerParams(dimension_semantics=("parallel",)),
        cost_estimate=pl.CostEstimate(flops=flops, transcendentals=0,
                                      bytes_accessed=bytes_accessed),
    )(x_flat, w_flat, masks)                             # (N, R, HW)

    # Rows are (c_out-major, rotation-minor) and lanes are row-major (H, W), so the
    # final torch layout is a pure metadata reshape (no transpose pass).
    return out.reshape(N, C_out, 4, H, W)


def _reference(x_nchw, weight_oihw):
    """Pure-JAX reference (lax.conv) for correctness check."""
    outs = []
    for i in range(4):
        w_rot = jnp.rot90(weight_oihw, k=i, axes=(2, 3))
        o = jax.lax.conv_general_dilated(
            x_nchw, w_rot, window_strides=(1, 1), padding="SAME",
            dimension_numbers=("NCHW", "OIHW", "NCHW"))
        outs.append(o)
    return jnp.stack(outs, axis=2)


if __name__ == "__main__":
    key = jax.random.PRNGKey(0)
    k_x, k_w = jax.random.split(key)

    # Small shapes consistent with the module: N=2, C_in=4, C_out=4, 16x16, 3x3 kernel.
    N, C_in, C_out, H, W, K = 2, 4, 4, 16, 16, 3
    x = jax.random.normal(k_x, (N, C_in, H, W), dtype=jnp.float32)
    # self.weight is never defined in the module's __init__; initialize it here.
    weight = jax.random.normal(k_w, (C_out, C_in, K, K), dtype=jnp.float32) * 0.1

    out = translation_layer_forward(x, weight)
    out = jax.block_until_ready(out)

    ref = _reference(x, weight)
    assert out.shape == (N, C_out, 4, H, W), out.shape
    assert jnp.allclose(out, ref, atol=1e-4, rtol=1e-4), "mismatch vs reference"

    print("KERNEL_OK")
</pallas_src>

<mosaic_0001>
module attributes {stable_mosaic.version = 11 : i64} {
  func.func @_conv4rot_kernel(%arg0: i32, %arg1: memref<1x4x290xf32, #tpu.memory_space<vmem>>, %arg2: memref<16x36xf32, #tpu.memory_space<vmem>>, %arg3: memref<3x1x256xf32, #tpu.memory_space<vmem>>, %arg4: memref<1x16x256xf32, #tpu.memory_space<vmem>>, %arg5: memref<36x256xf32, #tpu.memory_space<vmem>>) attributes {dimension_semantics = [#tpu.dimension_semantics<parallel>], iteration_bounds = array<i64: 2>, scalar_prefetch = 0 : i64, scratch_operands = 1 : i64, tpu.core_type = #tpu.core_type<tc>, window_params = [{transform_indices = @transform_0, window_bounds = array<i64: 1, 4, 290>}, {pipeline_mode = #tpu.pipeline_mode<synchronous>, transform_indices = @transform_1, window_bounds = array<i64: 16, 36>}, {pipeline_mode = #tpu.pipeline_mode<synchronous>, transform_indices = @transform_2, window_bounds = array<i64: 3, 1, 256>}, {transform_indices = @transform_3, window_bounds = array<i64: 1, 16, 256>}]} {
    %c0 = arith.constant 0 : index
    %c0_0 = arith.constant 0 : index
    %c0_1 = arith.constant 0 : index
    %0 = vector.load %arg1[%c0, %c0_0, %c0_1] : memref<1x4x290xf32, #tpu.memory_space<vmem>>, vector<1x4x290xf32>
    %1 = vector.shape_cast %0 : vector<1x4x290xf32> to vector<4x290xf32>
    %2 = vector.extract_strided_slice %1 {offsets = [0, 0], sizes = [4, 256], strides = [1, 1]} : vector<4x290xf32> to vector<4x256xf32>
    %c0_2 = arith.constant 0 : index
    %c0_3 = arith.constant 0 : index
    %c0_4 = arith.constant 0 : index
    %3 = vector.load %arg3[%c0_2, %c0_3, %c0_4] : memref<3x1x256xf32, #tpu.memory_space<vmem>>, vector<1x1x256xf32>
    %4 = vector.shape_cast %3 : vector<1x1x256xf32> to vector<1x256xf32>
    %5 = vector.broadcast %4 : vector<1x256xf32> to vector<4x256xf32>
    %6 = arith.mulf %2, %5 : vector<4x256xf32>
    %c0_5 = arith.constant 0 : index
    %c0_6 = arith.constant 0 : index
    %7 = vector.load %arg5[%c0_5, %c0_6] : memref<36x256xf32, #tpu.memory_space<vmem>>, vector<4x256xf32>
    tpu.vector_store %arg5[%c0_5, %c0_6], %6 {strides = array<i32>} : memref<36x256xf32, #tpu.memory_space<vmem>>, vector<4x256xf32>,
    %8 = vector.extract_strided_slice %1 {offsets = [0, 1], sizes = [4, 256], strides = [1, 1]} : vector<4x290xf32> to vector<4x256xf32>
    %c4 = arith.constant 4 : index
    %c0_7 = arith.constant 0 : index
    %9 = vector.load %arg5[%c4, %c0_7] : memref<36x256xf32, #tpu.memory_space<vmem>>, vector<4x256xf32>
    tpu.vector_store %arg5[%c4, %c0_7], %8 {strides = array<i32>} : memref<36x256xf32, #tpu.memory_space<vmem>>, vector<4x256xf32>,
    %10 = vector.extract_strided_slice %1 {offsets = [0, 2], sizes = [4, 256], strides = [1, 1]} : vector<4x290xf32> to vector<4x256xf32>
    %c2 = arith.constant 2 : index
    %c0_8 = arith.constant 0 : index
    %c0_9 = arith.constant 0 : index
    %11 = vector.load %arg3[%c2, %c0_8, %c0_9] : memref<3x1x256xf32, #tpu.memory_space<vmem>>, vector<1x1x256xf32>
    %12 = vector.shape_cast %11 : vector<1x1x256xf32> to vector<1x256xf32>
    %13 = vector.broadcast %12 : vector<1x256xf32> to vector<4x256xf32>
    %14 = arith.mulf %10, %13 : vector<4x256xf32>
    %c8 = arith.constant 8 : index
    %c0_10 = arith.constant 0 : index
    %15 = vector.load %arg5[%c8, %c0_10] : memref<36x256xf32, #tpu.memory_space<vmem>>, vector<4x256xf32>
    tpu.vector_store %arg5[%c8, %c0_10], %14 {strides = array<i32>} : memref<36x256xf32, #tpu.memory_space<vmem>>, vector<4x256xf32>,
    %16 = vector.extract_strided_slice %1 {offsets = [0, 16], sizes = [4, 256], strides = [1, 1]} : vector<4x290xf32> to vector<4x256xf32>
    %c0_11 = arith.constant 0 : index
    %c0_12 = arith.constant 0 : index
    %c0_13 = arith.constant 0 : index
    %17 = vector.load %arg3[%c0_11, %c0_12, %c0_13] : memref<3x1x256xf32, #tpu.memory_space<vmem>>, vector<1x1x256xf32>
    %18 = vector.shape_cast %17 : vector<1x1x256xf32> to vector<1x256xf32>
    %19 = vector.broadcast %18 : vector<1x256xf32> to vector<4x256xf32>
    %20 = arith.mulf %16, %19 : vector<4x256xf32>
    %c12 = arith.constant 12 : index
    %c0_14 = arith.constant 0 : index
    %21 = vector.load %arg5[%c12, %c0_14] : memref<36x256xf32, #tpu.memory_space<vmem>>, vector<4x256xf32>
    tpu.vector_store %arg5[%c12, %c0_14], %20 {strides = array<i32>} : memref<36x256xf32, #tpu.memory_space<vmem>>, vector<4x256xf32>,
    %22 = vector.extract_strided_slice %1 {offsets = [0, 17], sizes = [4, 256], strides = [1, 1]} : vector<4x290xf32> to vector<4x256xf32>
    %c16 = arith.constant 16 : index
    %c0_15 = arith.constant 0 : index
    %23 = vector.load %arg5[%c16, %c0_15] : memref<36x256xf32, #tpu.memory_space<vmem>>, vector<4x256xf32>
    tpu.vector_store %arg5[%c16, %c0_15], %22 {strides = array<i32>} : memref<36x256xf32, #tpu.memory_space<vmem>>, vector<4x256xf32>,
    %24 = vector.extract_strided_slice %1 {offsets = [0, 18], sizes = [4, 256], strides = [1, 1]} : vector<4x290xf32> to vector<4x256xf32>
    %c2_16 = arith.constant 2 : index
    %c0_17 = arith.constant 0 : index
    %c0_18 = arith.constant 0 : index
    %25 = vector.load %arg3[%c2_16, %c0_17, %c0_18] : memref<3x1x256xf32, #tpu.memory_space<vmem>>, vector<1x1x256xf32>
    %26 = vector.shape_cast %25 : vector<1x1x256xf32> to vector<1x256xf32>
    %27 = vector.broadcast %26 : vector<1x256xf32> to vector<4x256xf32>
    %28 = arith.mulf %24, %27 : vector<4x256xf32>
    %c20 = arith.constant 20 : index
    %c0_19 = arith.constant 0 : index
    %29 = vector.load %arg5[%c20, %c0_19] : memref<36x256xf32, #tpu.memory_space<vmem>>, vector<4x256xf32>
    tpu.vector_store %arg5[%c20, %c0_19], %28 {strides = array<i32>} : memref<36x256xf32, #tpu.memory_space<vmem>>, vector<4x256xf32>,
    %30 = vector.extract_strided_slice %1 {offsets = [0, 32], sizes = [4, 256], strides = [1, 1]} : vector<4x290xf32> to vector<4x256xf32>
    %c0_20 = arith.constant 0 : index
    %c0_21 = arith.constant 0 : index
    %c0_22 = arith.constant 0 : index
    %31 = vector.load %arg3[%c0_20, %c0_21, %c0_22] : memref<3x1x256xf32, #tpu.memory_space<vmem>>, vector<1x1x256xf32>
    %32 = vector.shape_cast %31 : vector<1x1x256xf32> to vector<1x256xf32>
    %33 = vector.broadcast %32 : vector<1x256xf32> to vector<4x256xf32>
    %34 = arith.mulf %30, %33 : vector<4x256xf32>
    %c24 = arith.constant 24 : index
    %c0_23 = arith.constant 0 : index
    %35 = vector.load %arg5[%c24, %c0_23] : memref<36x256xf32, #tpu.memory_space<vmem>>, vector<4x256xf32>
    tpu.vector_store %arg5[%c24, %c0_23], %34 {strides = array<i32>} : memref<36x256xf32, #tpu.memory_space<vmem>>, vector<4x256xf32>,
    %36 = vector.extract_strided_slice %1 {offsets = [0, 33], sizes = [4, 256], strides = [1, 1]} : vector<4x290xf32> to vector<4x256xf32>
    %c28 = arith.constant 28 : index
    %c0_24 = arith.constant 0 : index
    %37 = vector.load %arg5[%c28, %c0_24] : memref<36x256xf32, #tpu.memory_space<vmem>>, vector<4x256xf32>
    tpu.vector_store %arg5[%c28, %c0_24], %36 {strides = array<i32>} : memref<36x256xf32, #tpu.memory_space<vmem>>, vector<4x256xf32>,
    %38 = vector.extract_strided_slice %1 {offsets = [0, 34], sizes = [4, 256], strides = [1, 1]} : vector<4x290xf32> to vector<4x256xf32>
    %c2_25 = arith.constant 2 : index
    %c0_26 = arith.constant 0 : index
    %c0_27 = arith.constant 0 : index
    %39 = vector.load %arg3[%c2_25, %c0_26, %c0_27] : memref<3x1x256xf32, #tpu.memory_space<vmem>>, vector<1x1x256xf32>
    %40 = vector.shape_cast %39 : vector<1x1x256xf32> to vector<1x256xf32>
    %41 = vector.broadcast %40 : vector<1x256xf32> to vector<4x256xf32>
    %42 = arith.mulf %38, %41 : vector<4x256xf32>
    %c32 = arith.constant 32 : index
    %c0_28 = arith.constant 0 : index
    %43 = vector.load %arg5[%c32, %c0_28] : memref<36x256xf32, #tpu.memory_space<vmem>>, vector<4x256xf32>
    tpu.vector_store %arg5[%c32, %c0_28], %42 {strides = array<i32>} : memref<36x256xf32, #tpu.memory_space<vmem>>, vector<4x256xf32>,
    %c0_29 = arith.constant 0 : index
    %c0_30 = arith.constant 0 : index
    %44 = vector.load %arg2[%c0_29, %c0_30] : memref<16x36xf32, #tpu.memory_space<vmem>>, vector<16x36xf32>
    %c0_31 = arith.constant 0 : index
    %c0_32 = arith.constant 0 : index
    %45 = vector.load %arg5[%c0_31, %c0_32] : memref<36x256xf32, #tpu.memory_space<vmem>>, vector<36x256xf32>
    %cst = arith.constant dense<0.000000e+00> : vector<16x256xf32>
    %46 = tpu.matmul %44, %45, %cst {dimension_numbers = #tpu.dot_dimension_numbers<[1], [0], [0], [1], [0, 0, 1, 1], [], []>} : vector<16x36xf32>, vector<36x256xf32>, vector<16x256xf32> -> vector<16x256xf32>
    %c0_33 = arith.constant 0 : index
    %c0_34 = arith.constant 0 : index
    %c0_35 = arith.constant 0 : index
    %47 = vector.load %arg4[%c0_33, %c0_34, %c0_35] : memref<1x16x256xf32, #tpu.memory_space<vmem>>, vector<1x16x256xf32>
    %48 = vector.shape_cast %47 : vector<1x16x256xf32> to vector<16x256xf32>
    %49 = vector.shape_cast %46 : vector<16x256xf32> to vector<1x16x256xf32>
    tpu.vector_store %arg4[%c0_33, %c0_34, %c0_35], %49 {strides = array<i32>} : memref<1x16x256xf32, #tpu.memory_space<vmem>>, vector<1x16x256xf32>,
    return
  }
  func.func @transform_0(%arg0: i32) -> (i32, i32, i32) {
    %c0_i32 = arith.constant 0 : i32
    %c0_i32_0 = arith.constant 0 : i32
    %c0_i32_1 = arith.constant 0 : i32
    return %arg0, %c0_i32, %c0_i32_0 : i32, i32, i32
  }
  func.func @transform_1(%arg0: i32) -> (i32, i32) {
    %c0_i32 = arith.constant 0 : i32
    %c0_i32_0 = arith.constant 0 : i32
    %c0_i32_1 = arith.constant 0 : i32
    return %c0_i32, %c0_i32_0 : i32, i32
  }
  func.func @transform_2(%arg0: i32) -> (i32, i32, i32) {
    %c0_i32 = arith.constant 0 : i32
    %c0_i32_0 = arith.constant 0 : i32
    %c0_i32_1 = arith.constant 0 : i32
    %c0_i32_2 = arith.constant 0 : i32
    return %c0_i32, %c0_i32_0, %c0_i32_1 : i32, i32, i32
  }
  func.func @transform_3(%arg0: i32) -> (i32, i32, i32) {
    %c0_i32 = arith.constant 0 : i32
    %c0_i32_0 = arith.constant 0 : i32
    %c0_i32_1 = arith.constant 0 : i32
    return %arg0, %c0_i32, %c0_i32_0 : i32, i32, i32
  }
}

</mosaic_0001>

<bundles_post_ra>
// kernel: tpu_custom_call.1
= control target key start
LH: loop header
LB: loop body
LE: loop exit
PB: predicated region body
PF: predicated region fallthrough
CT: control target
= control target key end

     0   :  { %8 = vsyncpa [#allocation4], 0  ;;  %s1252_s0 = inlined_call_operand.hbm [shape: f32[2,4,290], index: 0, kind: input, shape index: {}]   ;;  %s1253_s1 = inlined_call_operand.hbm [shape: f32[16,36], index: 1, kind: input, shape index: {}]   ;;  %s1254_s2 = inlined_call_operand.hbm [shape: f32[3,1,256], index: 2, kind: input, shape index: {}]   ;;  %s1255_s3 = inlined_call_operand.hbm [shape: f32[2,16,256], index: 3, kind: output, shape index: {}]  }
   0x1   :  { %10 = vsyncpa [#allocation4 + $0x1], 0 }
   0x2   :  { %11 = vsyncpa [#allocation7], 0 }
   0x3   :  { %12 = vsyncpa [#allocation5], 0 }
   0x4   :  { %14 = vsyncpa [#allocation5 + $0x1], 0  ;;  %s991_s12 = smov 0   ;;  %s993_s13 = smov 0  }
   0x5   :  { %s995_s14 = smov 0   ;;  %s997_s15 = smov 0  }
   0x6 LB: > { %s1012_s16 = sadd.s32 4294967295, %s946_s15   ;;  %s676_s17 = sadd.s32 4294967294, %s946_s15   ;;  %s946_s15 = sphi %s997_s15, %s1277_s15   ;;  %s942_s14 = sphi %s995_s14, %s1276_s14   ;;  %s938_s13 = sphi %s993_s13, %s1275_s13   ;;  %s934_s12 = sphi %s991_s12, %s1274_s12  }
   0x7   : > { %p40_p0 = scmp.ne.s32.totalorder %s938_s13, %s934_s12  ;;  %p1256_p1 = scmp.eq.s32.totalorder %s1012_s16, 0 }
   0x8   : > { %p112_p3 = scmp.eq.s32.totalorder %s676_s17, 1  ;;  %p677_p5 = scmp.ge.s32.totalorder %s946_s15, 1 }
   0x9   : > { %p1021_p4 = por %p1256_p1, %p40_p0  ;;  %p119_p7 = scmp.lt.s32.totalorder %s946_s15, 3 }
   0xa   : > { %p1026_p6 = por %p112_p3, %p40_p0  ;;  %s948_s21 = smov [#allocation6]  }
   0xb   : > { %s1260_s18 = scalar_select %p1021_p4, 1, 0 }
   0xc   : > { %s1261_s19 = scalar_select %p1026_p6, 1, 0 }
   0xd   : > { %p1031_p8 = pnand %p677_p5, %p119_p7  ;;  %s131_s22 = sshll.u32 %s948_s21, 4  ;;  %s132_s22 = int_to_ptr.vmem [resolvable:$true] %s131_s22 }
   0xe   : > { %s949_s24 = smov [#allocation8]   ;;  %s809_s26 = scalar_lea.vmem %s132_s22, 256 }
   0xf   : > { %s1262_s20 = scalar_select %p1031_p8, 1, 0 }
  0x10   : > { %p721_p9 = pneg %p1031_p8  ;;  %s144_s25 = sshll.u32 %s949_s24, 4  ;;  %s145_s25 = int_to_ptr.vmem [resolvable:$true] %s144_s25 }
  0x11   : > { %p810_p13 = scmp.ne.s32.totalorder %s132_s22, %s809_s26  ;;  %p817_p5 = scmp.lt.s32.totalorder %s132_s22, %s132_s22 }
  0x12   : > { %p1040_p11 = pnand %p721_p9, %p1256_p1  ;;  %p818_p7 = scmp.lt.s32.totalorder %s809_s26, %s809_s26 }
  0x14   : > { %p800_p12 = pneg %p1040_p11  ;;  %p819_p10 = por %p818_p7, %p817_p5 }
  0x16   : > { %p812_p0 = pnand %p810_p13, %p800_p12 }
  0x18   : > { %p813_p3 = pneg %p812_p0 }
  0x1a   : > { %p820_p9 = pnand %p819_p10, %p813_p3 }
  0x1c   : > { %823 = shalt.err (!%p820_p9)
}
  0x1d   : > { %s950_s27 = smov 128   ;;  %s951_s28 = smov 8  }
  0x1e   : > { %724 = dma.hbm_to_vmem [thread:$0]  (!%p1040_p11), %s1253_s1, 256, %s132_s22, [#allocation7], %s950_s27, %s950_s27, %s951_s28  }
  0x1f   : > { %s835_s4 = scalar_lea.vmem %s145_s25, 96  ;;  %p843_p2 = scmp.lt.s32.totalorder %s145_s25, %s145_s25 }
  0x20   : > { %p836_p1 = scmp.ne.s32.totalorder %s145_s25, %s835_s4  ;;  %p844_p6 = scmp.lt.s32.totalorder %s835_s4, %s835_s4 }
  0x22   : > { %p838_p13 = pnand %p836_p1, %p800_p12  ;;  %p845_p5 = por %p844_p6, %p843_p2 }
  0x24   : > { %p839_p0 = pneg %p838_p13 }
  0x26   : > { %p846_p10 = pnand %p845_p5, %p839_p0 }
  0x28   : > { %849 = shalt.err (!%p846_p10)
}
  0x29   : > { %s952_s5 = smov 32   ;;  %s953_s6 = smov 2  }
  0x2a   : > { %727 = dma.hbm_to_vmem [thread:$0]  (!%p1040_p11), %s1254_s2, 96, %s145_s25, [#allocation7], %s952_s5, %s952_s5, %s953_s6  }
  0x2b   : > { %s1063_s9 = sadd.s32 1, %s946_s15   ;;  %s27_s11 = sadd.s32 1, %s942_s14 }
  0x2c   : > { %s24_s10 = ssub.s32 %s946_s15, %s1063_s9  ;;  %p34_p2 = scmp.ne.s32.totalorder %s942_s14, %s938_s13 }
  0x2d   : > { %p25_p1 = scmp.eq.s32.totalorder %s24_s10, 0  ;;  %p35_p6 = scmp.eq.s32.totalorder %s946_s15, 0 }
  0x2e   : > { %p1264_p3 = scmp.eq.s32.totalorder %s1012_s16, 1  ;;  %p738_p9 = scmp.lt.s32.totalorder %s946_s15, 2 }
  0x2f   : > { %s1072_s17 = scalar_select %p25_p1, %s942_s14, %s27_s11  }
  0x30   : > { %p36_p12 = por %p35_p6, %p34_p2  ;;  %p1076_p7 = por %p1264_p3, %p34_p2 }
  0x31   : > { %s158_s22 = sand.u32 1, %s942_s14   ;;  %s707_s24 = smul.u32 192, %s946_s15 }
  0x32   : > { %s1265_s21 = scalar_select %p1076_p7, 1, 0 }
  0x33   : > { %s706_s23 = smul.u32 12, %s158_s22  ;;  %p1083_p11 = pnand %p738_p9, %p36_p12 }
  0x34   : > { %s1090_s28 = scalar_lea.hbm %s1252_s0, %s707_s24  ;;  %s159_s4 = scalar_lea.sflag [#allocation4], %s158_s22 }
  0x35   : > { %s162_s29 = scalar_lea.vmem [#allocation3], %s706_s23  ;;  %s850_s5 = scalar_lea.hbm %s1090_s28, 192 }
  0x36   : > { %s170_s30 = sshll.u32 %s162_s29, 4  ;;  %p851_p13 = scmp.ne.s32.totalorder %s1090_s28, %s850_s5  ;;  %s171_s30 = int_to_ptr.vmem [resolvable:$true] %s170_s30 }
  0x37   : > { %p852_p0 = pneg %p1083_p11  ;;  %s855_s8 = scalar_lea.hbm %s1252_s0, 384 }
  0x38   : > { %p856_p1 = scmp.lt.s32.totalorder %s1090_s28, %s1252_s0  ;;  %p857_p2 = scmp.lt.s32.totalorder %s855_s8, %s850_s5 }
  0x39   : > { %p853_p5 = pnand %p852_p0, %p851_p13 }
  0x3a   : > { %p858_p6 = por %p857_p2, %p856_p1 }
  0x3b   : > { %p854_p10 = pneg %p853_p5 }
  0x3d   : > { %p859_p12 = pnand %p858_p6, %p854_p10 }
  0x3f   : > { %862 = shalt.err (!%p859_p12)
}
  0x40   : > { %s863_s23 = scalar_lea.vmem %s171_s30, 192  ;;  %s954_s22 = smov [#allocation3]  }
  0x41   : > { %p864_p3 = scmp.ne.s32.totalorder %s171_s30, %s863_s23  ;;  %s868_s24 = sshll.u32 %s954_s22, 4  ;;  %s869_s24 = int_to_ptr.vmem [resolvable:$false] %s868_s24 }
  0x42   : > { %s870_s26 = scalar_lea.vmem %s869_s24, 384  ;;  %p871_p13 = scmp.lt.s32.totalorder %s171_s30, %s869_s24 }
  0x43   : > { %p866_p9 = pnand %p864_p3, %p852_p0  ;;  %p872_p5 = scmp.lt.s32.totalorder %s870_s26, %s863_s23 }
  0x45   : > { %p867_p7 = pneg %p866_p9  ;;  %p873_p4 = por %p872_p5, %p871_p13 }
  0x47   : > { %p874_p8 = pnand %p873_p4, %p867_p7 }
  0x49   : > { %877 = shalt.err (!%p874_p8)
}
  0x4a   : > { %731 = dma.hbm_to_vmem [thread:$0]  (!%p1083_p11), %s1090_s28, 192, %s171_s30, %s159_s4  }
  0x4b   : > { %p1267_p10 = scmp.ne.s32.totalorder %s1262_s20, 0 }
  0x4c   : > { %s1109_s27 = sand.u32 (!%p1267_p10), 1, %s938_s13   ;;  %p1268_p0 = scmp.ne.s32.totalorder (!%p1267_p10), %s1260_s18, 0 }
  0x4d   : > { %179 = sbr.rel (%p1267_p10) target bundleno = 586 (0x24a), region = 32  ;;  %s182_s5 = scalar_lea.sflag (!%p1267_p10), [#allocation4], %s1109_s27 }
  0x4e   : > { %s708_s29 = smul.u32 (!%p1267_p10), 12, %s1109_s27 }
  0x50   : > { %s1113_s6 = scalar_lea.vmem (!%p1267_p10), [#allocation3], %s708_s29 }
  0x52   : > { %921 = dma.done.wait (%p1268_p0), %s182_s5, 192  }
  0x53   : > { %923 = vsyncadd (%p1268_p0), %s182_s5, 4294967104  ;;  %p1269_p4 = scmp.eq.s32.totalorder %s1012_s16, 0 }
  0x55   : > { %925 = dma.done.wait (%p1269_p4), [#allocation7], 352   ;;  %p1270_p8 = pmov %p1269_p4 }
  0x56   : > { %v220_v0 = vlaneseq  ;;  %v427_v4 = vld [vmem:[#allocation8 + $0x4] sm:$0x3]  ;;  %v378_v8 = vld [vmem:[#allocation8] sm:$0x3]  ;;  %s955_s18 = smov 34   ;;  %s956_s20 = smov 18  }
  0x57   : > { %927 = vsyncadd (%p1270_p8), [#allocation7], 4294966944  ;;  %v341_v5 = vld [vmem:[#allocation8 + $0x4] sm:$0x3]  ;;  %v290_v14 = vld [vmem:[#allocation8] sm:$0x3] }
  0x58   : > { %v221_v1 = vshrl.u32 %v220_v0, 7  ;;  %v254_v9 = vld [vmem:[#allocation8 + $0x4] sm:$0x3]  ;;  %v1138_v23 = vld [vmem:[%s1113_s6 + $0x8] sm:$0xf]  ;;  %s957_s25 = smov 32  }
  0x59   : > { %s958_s28 = smov 2   ;;  %v1142_v25 = vcombine.low %v1138_v23, %v1138_v23  ;;  %s959_s30 = smov 16   ;;  %v1146_v26 = vld [vmem:[%s1113_s6] sm:$0xff]  ;;  %vm392_vm0 = vcmask 261120   ;;  %vm355_vm1 = vcmask 146432   ;;  %vm304_vm2 = vcmask 130048  }
  0x5a   : > { %v1123_v2 = vsub.s32 0, %v221_v1  ;;  %v1125_v3 = vsub.s32 1, %v221_v1  ;;  %s960_s4 = smov 95   ;;  %v1151_v27 = vcombine.low %v1146_v26, %v1146_v26  ;;  %v327_v28 = vcombine.high %v1146_v26, %v1146_v26  ;;  %s961_s7 = smov 111   ;;  %v218_v46 = vld [vmem:[#allocation8] sm:$0x3] }
  0x5b   : > { %s962_s8 = smov 127   ;;  %s963_s10 = smov 94   ;;  %vm441_vm3 = vcmask 277504   ;;  %vm420_vm4 = vcmask 777216   ;;  %vm268_vm5 = vcmask 15360   ;;  %vm334_vm6 = vcmask 908288  }
  0x5c   : > { %v432_v6 = vrot.slane %v427_v4, %v1123_v2  ;;  %v436_v7 = vrot.slane %v427_v4, %v1125_v3  ;;  %v346_v10 = vrot.slane %v341_v5, %v1123_v2  ;;  %v350_v11 = vrot.slane %v341_v5, %v1125_v3  ;;  %s964_s11 = smov 96   ;;  %s965_s23 = smov 126  }
  0x5d   : > { %v383_v12 = vrot.slane %v378_v8, %v1123_v2  ;;  %v387_v13 = vrot.slane %v378_v8, %v1125_v3  ;;  %v259_v16 = vrot.slane %v254_v9, %v1123_v2  ;;  %v263_v17 = vrot.slane %v254_v9, %v1125_v3  ;;  %s966_s22 = smov 110   ;;  %s967_s24 = smov 112  }
  0x5e   : > { %v437_v15 = vcombine.low %v432_v6, %v436_v7  ;;  %v351_v18 = vcombine.low %v346_v10, %v350_v11  ;;  %v295_v20 = vrot.slane %v290_v14, %v1123_v2  ;;  %v299_v21 = vrot.slane %v290_v14, %v1125_v3  ;;  %s685_s26 = sshll.u32 %s1109_s27, 5  ;;  %s695_s6 = sshll.u32 %s1012_s16, 9 }
  0x5f   : > { %v388_v19 = vcombine.low %v383_v12, %v387_v13  ;;  %v264_v22 = vcombine.low %v259_v16, %v263_v17  ;;  %v223_v53 = vrot.slane %v218_v46, %v1123_v2  ;;  %v227_v54 = vrot.slane %v218_v46, %v1125_v3  ;;  %s215_s29 = scalar_lea.vmem [#allocation9], %s685_s26  ;;  %p1271_p11 = scmp.ne.s32.totalorder %s1265_s21, 0 }
  0x60   : > { %438 = vrot.lane.b32.xlu0 %v437_v15, %s955_s18  ;;  %352 = vrot.lane.b32.xlu1 %v351_v18, %s956_s20  ;;  %v300_v24 = vcombine.low %v295_v20, %v299_v21  ;;  %v968_v13 = vmov 0.0   ;;  %vm371_vm7 = vcmask 900096   ;;  %vm320_vm8 = vcmask 916480   ;;  %s584_s5 = sshll.u32 %s215_s29, 4  ;;  %s1203_s5 = int_to_ptr.vmem [resolvable:$true] %s584_s5 }
  0x61   : > { %v228_v0 = vcombine.low %v223_v53, %v227_v54  ;;  %553 = vmatprep.mubr.f32.mxu0 %v968_v13  ;;  %559 = vmatprep.mubr.f32.mxu1 %v968_v13  ;;  %vm407_vm9 = vcmask 785408   ;;  %vm456_vm10 = vcmask 769024   ;;  %vm283_vm11 = vcmask 1031168   ;;  %v463_v53 = vld [vmem:[#allocation6] sm:$0xff]  ;;  %v464_v54 = vld [vmem:[#allocation6 + $0x8] sm:$0xff]  ;;  %s878_s16 = scalar_lea.vmem %s1203_s5, 512 }
  0x62   : > { %vm246_vm12 = vcmask 1039360   ;;  %vm482_vm13 = vcmask 1043456   ;;  %vm475_vm14 = vcmask 293888   ;;  %p879_p7 = scmp.ne.s32.totalorder %s1203_s5, %s878_s16 }
  0x63   : > { %v230_v4 = vmul.f32 %v228_v0, %v1146_v26 }
  0x64   : > { %389 = vrot.lane.b32.xlu0 %v388_v19, %s957_s25  ;;  %265 = vrot.lane.b32.xlu1 %v264_v22, %s958_s28  ;;  %s1208_s25 = scalar_lea.hbm %s1255_s3, %s695_s6  ;;  %s571_s28 = scalar_lea.sflag [#allocation5], %s1109_s27 }
  0x65   : > { %234 = vst [vmem:[#allocation2 + $0x30] sm:$0xf] %v230_v4  ;;  %v232_v9 = vcombine.high %v230_v4, %v230_v4  ;;  %p880_p1 = pnand %p879_p7, %p1271_p11 }
  0x67   : > { %235 = vst [vmem:[#allocation2] sm:$0xf] %v232_v9  ;;  %p881_p2 = pneg %p880_p1 }
  0x68   : > { %301 = vrot.lane.b32.xlu0 %v300_v24, %s959_s30  ;;  %418 = vrot.lane.b32.xlu1 %v1142_v25, %s960_s4 }
  0x6c   : > { %416 = vrot.lane.b32.xlu0 %v1146_v26, %s960_s4  ;;  %414 = vrot.lane.b32.xlu1 %v1151_v27, %s960_s4  ;;  %s969_s4 = smov [#allocation9]  }
  0x70   : > { %330 = vrot.lane.b32.xlu0 %v327_v28, %s961_s7  ;;  %332 = vrot.lane.b32.xlu1 %v1138_v23, %s961_s7 }
  0x74   : > { %328 = vrot.lane.b32.xlu0 %v1146_v26, %s961_s7  ;;  %s882_s7 = sshll.u32 %s969_s4, 4  ;;  %s883_s7 = int_to_ptr.vmem [resolvable:$false] %s882_s7 }
  0x75   : > { %p885_p6 = scmp.lt.s32.totalorder %s1203_s5, %s883_s7 }
  0x78   : > { %242 = vrot.lane.b32.xlu0 %v1146_v26, %s962_s8 }
  0xd2   : > { %v439_v29 = vpop.permute.xlu0 %438  ;;  %v353_v31 = vpop.permute.xlu1 %352 }
  0xd3   : > { %v440_v30 = vrot.slane %v439_v29, 4  ;;  %v354_v34 = vrot.slane %v353_v31, 4 }
  0xd5   : > { %v446_v32 = vmul.f32 %v440_v30, %v1138_v23  ;;  %v356_v42 = vsel %vm355_vm1, %v354_v34, %v353_v31  ;;  %v442_v48 = vsel %vm441_vm3, %v440_v30, %v439_v29  ;;  %v360_v58 = vmul.f32 %v354_v34, %v1138_v23 }
  0xd6   : > { %v390_v33 = vpop.permute.xlu0 %389  ;;  %v266_v36 = vpop.permute.xlu1 %265  ;;  %v359_v49 = vmul.f32 %v356_v42, %v1146_v26  ;;  %v445_v57 = vmul.f32 %v442_v48, %v1146_v26 }
  0xd7   : > { %v391_v35 = vrot.slane %v390_v33, 4  ;;  %454 = vrot.lane.b32.xlu0 %v446_v32, %s963_s10  ;;  %v267_v39 = vrot.slane %v266_v36, 4  ;;  %v364_v1 = vcombine.low %v360_v58, %v360_v58 }
  0xd8   : > { %v449_v8 = vcombine.high %v445_v57, %v445_v57  ;;  %v363_v11 = vcombine.low %v359_v49, %v359_v49 }
  0xd9   : > { %v393_v37 = vsel %vm392_vm0, %v391_v35, %v390_v33  ;;  %v397_v38 = vmul.f32 %v391_v35, %v1138_v23  ;;  %v273_v43 = vmul.f32 %v267_v39, %v1138_v23  ;;  %v269_v60 = vsel %vm268_vm5, %v267_v39, %v266_v36 }
  0xda   : > { %v396_v40 = vmul.f32 %v393_v37, %v1146_v26  ;;  %v302_v41 = vpop.permute.xlu0 %301  ;;  %v419_v45 = vpop.permute.xlu1 %418  ;;  %v272_v2 = vmul.f32 %v269_v60, %v1146_v26 }
  0xdb   : > { %405 = vrot.lane.b32.xlu1 %v397_v38, %s964_s11  ;;  %v303_v44 = vrot.slane %v302_v41, 4 }
  0xdc   : > { %401 = vrot.lane.b32.xlu0 %v396_v40, %s964_s11  ;;  %v400_v7 = vcombine.high %v396_v40, %v396_v40  ;;  %v276_v10 = vcombine.high %v272_v2, %v272_v2 }
  0xdd   : > { %v305_v47 = vsel %vm304_vm2, %v303_v44, %v302_v41  ;;  %v309_v61 = vmul.f32 %v303_v44, %v1138_v23 }
  0xde   : > { %v417_v50 = vpop.permute.xlu0 %416  ;;  %v415_v52 = vpop.permute.xlu1 %414  ;;  %v308_v55 = vmul.f32 %v305_v47, %v1146_v26 }
  0xdf   : > { %281 = vrot.lane.b32.xlu1 %v273_v43, %s965_s23  ;;  %v422_v51 = vsel %vm420_vm4, %v417_v50, %v419_v45  ;;  %v421_v56 = vsel %vm420_vm4, %v415_v52, %v417_v50  ;;  %v313_v5 = vcombine.low %v309_v61, %v309_v61 }
  0xe0   : > { %367 = vrot.lane.b32.xlu0 %v359_v49, %s966_s22  ;;  %426 = vst [vmem:[#allocation2 + $0x20] sm:$0xf0] %v422_v51  ;;  %425 = vst [vmem:[#allocation2 + $0x8] sm:$0xf0] %v421_v56  ;;  %v312_v12 = vcombine.low %v308_v55, %v308_v55 }
  0xe2   : > { %v331_v59 = vpop.permute.xlu0 %330  ;;  %v333_v62 = vpop.permute.xlu1 %332 }
  0xe3   : > { %450 = vrot.lane.b32.xlu1 %v445_v57, %s963_s10  ;;  %v336_v63 = vsel %vm334_vm6, %v331_v59, %v333_v62 }
  0xe4   : > { %316 = vrot.lane.b32.xlu0 %v308_v55, %s967_s24  ;;  %340 = vst [vmem:[#allocation2 + $0x28] sm:$0xf] %v336_v63 }
  0xe6   : > { %v329_v3 = vpop.permute.xlu0 %328 }
  0xe7   : > { %369 = vrot.lane.b32.xlu1 %v364_v1, %s966_s22  ;;  %v335_v6 = vsel %vm334_vm6, %v329_v3, %v331_v59 }
  0xe8   : > { %277 = vrot.lane.b32.xlu0 %v272_v2, %s965_s23  ;;  %339 = vst [vmem:[#allocation2 + $0x48] sm:$0xf] %v335_v6 }
  0xea   : > { %v243_v14 = vpop.permute.xlu0 %242 }
  0xeb   : > { %318 = vrot.lane.b32.xlu1 %v313_v5, %s967_s24 }
  0xec   : > { %403 = vrot.lane.b32.xlu0 %v400_v7, %s964_s11 }
  0xef   : > { %452 = vrot.lane.b32.xlu1 %v449_v8, %s963_s10 }
  0xf0   : > { %279 = vrot.lane.b32.xlu0 %v276_v10, %s965_s23 }
  0xf3   : > { %365 = vrot.lane.b32.xlu1 %v363_v11, %s966_s22 }
  0xf4   : > { %240 = vrot.lane.b32.xlu0 %v1151_v27, %s962_s8 }
  0xf7   : > { %314 = vrot.lane.b32.xlu1 %v312_v12, %s967_s24 }
  0xfb   : > { %244 = vrot.lane.b32.xlu1 %v1142_v25, %s962_s8  ;;  %s884_s8 = scalar_lea.vmem %s883_s7, 1024 }
  0xfc   : > { %p886_p12 = scmp.lt.s32.totalorder %s884_s8, %s878_s16 }
  0xfe   : > { %p887_p3 = por %p886_p12, %p885_p6 }
 0x100   : > { %p888_p9 = pnand %p887_p3, %p881_p2 }
 0x149   : > { %v455_v15 = vpop.permute.xlu0 %454 }
 0x14d   : > { %v406_v16 = vpop.permute.xlu1 %405 }
 0x14e   : > { %v402_v17 = vpop.permute.xlu0 %401 }
 0x151   : > { %v282_v18 = vpop.permute.xlu1 %281 }
 0x152   : > { %v368_v19 = vpop.permute.xlu0 %367 }
 0x155   : > { %v451_v20 = vpop.permute.xlu1 %450 }
 0x156   : > { %v317_v21 = vpop.permute.xlu0 %316 }
 0x159   : > { %v370_v22 = vpop.permute.xlu1 %369 }
 0x15a   : > { %v373_v23 = vsel %vm371_vm7, %v368_v19, %v370_v22  ;;  %v278_v24 = vpop.permute.xlu0 %277 }
 0x15b   : > { %377 = vst [vmem:[#allocation2 + $0x28] sm:$0xf0] %v373_v23 }
 0x15d   : > { %v319_v26 = vpop.permute.xlu1 %318 }
 0x15e   : > { %v322_v27 = vsel %vm320_vm8, %v317_v21, %v319_v26  ;;  %v404_v25 = vpop.permute.xlu0 %403 }
 0x15f   : > { %326 = vst [vmem:[#allocation2 + $0x10] sm:$0xf0] %v322_v27  ;;  %v408_v28 = vsel %vm407_vm9, %v402_v17, %v404_v25  ;;  %v409_v29 = vsel %vm407_vm9, %v404_v25, %v406_v16 }
 0x160   : > { %412 = vst [vmem:[#allocation2 + $0x8] sm:$0xf] %v408_v28  ;;  %413 = vst [vmem:[#allocation2 + $0x20] sm:$0xf] %v409_v29 }
 0x161   : > { %v453_v30 = vpop.permute.xlu1 %452 }
 0x162   : > { %v457_v31 = vsel %vm456_vm10, %v451_v20, %v453_v30  ;;  %v458_v32 = vsel %vm456_vm10, %v453_v30, %v455_v15  ;;  %v280_v33 = vpop.permute.xlu0 %279  ;;  %v470_v48 = vld [vmem:[#allocation2 + $0x28] sm:$0xff] }
 0x163   : > { %461 = vst [vmem:[#allocation2 + $0x40] sm:$0xf] %v457_v31  ;;  %462 = vst [vmem:[#allocation2 + $0x38] sm:$0xf] %v458_v32  ;;  %v284_v34 = vsel %vm283_vm11, %v278_v24, %v280_v33  ;;  %v285_v35 = vsel %vm283_vm11, %v280_v33, %v282_v18 }
 0x164   : > { %288 = vst [vmem:[#allocation2 + $0x18] sm:$0xf] %v284_v34  ;;  %289 = vst [vmem:[#allocation2 + $0x10] sm:$0xf] %v285_v35 }
 0x165   : > { %v366_v36 = vpop.permute.xlu1 %365 }
 0x166   : > { %v372_v37 = vsel %vm371_vm7, %v366_v36, %v368_v19  ;;  %v241_v38 = vpop.permute.xlu0 %240 }
 0x167   : > { %376 = vst [vmem:[#allocation2 + $0x48] sm:$0xf0] %v372_v37  ;;  %v247_v39 = vsel %vm246_vm12, %v241_v38, %v243_v14  ;;  %v472_v44 = vld [vmem:[#allocation2 + $0x20] sm:$0xff]  ;;  %v471_v46 = vld [vmem:[#allocation2 + $0x8] sm:$0xff] }
 0x168   : > { %251 = vst [vmem:[#allocation2 + $0x30] sm:$0xf0] %v247_v39 }
 0x169   : > { %v315_v40 = vpop.permute.xlu1 %314 }
 0x16a   : > { %v321_v41 = vsel %vm320_vm8, %v315_v40, %v317_v21  ;;  %v474_v42 = vld [vmem:[#allocation2 + $0x38] sm:$0xf]  ;;  %v473_v43 = vld [vmem:[#allocation2 + $0x40] sm:$0xf] }
 0x16b   : > { %325 = vst [vmem:[#allocation2 + $0x18] sm:$0xf0] %v321_v41  ;;  %686 = vmatprep.subr.msk.mxu0 %vm482_vm13, %v474_v42  ;;  %696 = vmatprep.subr.msk.mxu1 %vm482_vm13, %v474_v42  ;;  %v468_v50 = vld [vmem:[#allocation2 + $0x10] sm:$0xff] }
 0x16c   : > { %687 = vmatpush1.msk.msra.mxu0 %vm482_vm13, %v473_v43  ;;  %701 = vmatpush1.msk.msra.mxu1 %vm482_vm13, %v473_v43 }
 0x16d   : > { %513 = vmatprep.subr.mxu0 %v472_v44  ;;  %697 = vmatprep.subr.mxu1 %v472_v44  ;;  %v245_v45 = vpop.permute.xlu1 %244 }
 0x16e   : > { %v248_v47 = vsel %vm246_vm12, %v243_v14, %v245_v45  ;;  %514 = vmatpush1.msra.mxu0 %v471_v46  ;;  %702 = vmatpush1.msra.mxu1 %v471_v46  ;;  %v469_v49 = vld [vmem:[#allocation2 + $0x48] sm:$0xff] }
 0x16f   : > { %252 = vst [vmem:[#allocation2] sm:$0xf0] %v248_v47  ;;  %515 = vmatprep.subr.mxu0 %v470_v48  ;;  %698 = vmatprep.subr.mxu1 %v470_v48  ;;  %v465_v55 = vld [vmem:[#allocation2 + $0x30] sm:$0xff] }
 0x170   : > { %516 = vmatpush1.msra.mxu0 %v469_v49  ;;  %703 = vmatpush1.msra.mxu1 %v469_v49 }
 0x171   : > { %517 = vmatprep.subr.mxu0 %v468_v50  ;;  %699 = vmatprep.subr.mxu1 %v468_v50 }
 0x172   : > { %v467_v51 = vld [vmem:[#allocation2 + $0x18] sm:$0xff] }
 0x173   : > { %518 = vmatpush1.msra.mxu0 %v467_v51  ;;  %704 = vmatpush1.msra.mxu1 %v467_v51 }
 0x176   : > { %v466_v52 = vld [vmem:[#allocation2] sm:$0xff] }
 0x177   : > { %519 = vmatprep.subr.mxu0 %v466_v52  ;;  %700 = vmatprep.subr.mxu1 %v466_v52 }
 0x178   : > { %520 = vmatpush1.msra.mxu0 %v465_v55  ;;  %705 = vmatpush1.msra.mxu1 %v465_v55 }
 0x179   : > { %688 = vmatmul.mubr.msk.f32.vlgmr.msra.gmra.mxu0 %vm475_vm14, %v463_v53  ;;  %689 = vmatmul.mubr.msk.f32.vlgmr.msra.gmra.mxu1 %vm475_vm14, %v464_v54 }
 0x239   : > { %v555_v56 = vpop.f32.mrf.mxu0  ;;  %v561_v57 = vpop.f32.mrf.mxu1 }
 0x23a   : > { %566 = vst [vmem:[%s215_s29] sm:$0xff] %v555_v56  ;;  %568 = vst [vmem:[%s215_s29 + $0x10] sm:$0xff] %v561_v57 }
 0x23b   : > { %v557_v58 = vpop.f32.mrf.mxu0  ;;  %v563_v59 = vpop.f32.mrf.mxu1 }
 0x23c   : > { %567 = vst [vmem:[%s215_s29 + $0x8] sm:$0xff] %v557_v58  ;;  %569 = vst [vmem:[%s215_s29 + $0x18] sm:$0xff] %v563_v59 }
 0x23d   : > { %891 = shalt.err (!%p888_p9)
}
 0x23e   : > { %s892_s10 = scalar_lea.hbm %s1208_s25, 512  ;;  %s896_s22 = scalar_lea.hbm %s1255_s3, 1024 }
 0x23f   : > { %p893_p13 = scmp.ne.s32.totalorder %s1208_s25, %s892_s10  ;;  %p897_p0 = scmp.lt.s32.totalorder %s1208_s25, %s1255_s3 }
 0x240   : > { %p898_p4 = scmp.lt.s32.totalorder %s896_s22, %s892_s10 }
 0x241   : > { %p894_p5 = pnand %p893_p13, %p1271_p11 }
 0x242   : > { %p899_p8 = por %p898_p4, %p897_p0 }
 0x243   : > { %p895_p10 = pneg %p894_p5 }
 0x245   : > { %p900_p7 = pnand %p899_p8, %p895_p10 }
 0x247   : > { %903 = shalt.err (!%p900_p7)
}
 0x248   : > { %s970_s29 = smov 256  }
 0x249   : > { %719 = dma.vmem_to_hbm [thread:$0]  (%p1271_p11), %s1203_s5, 512, %s1208_s25, %s571_s28, %s970_s29, %s970_s29, %s959_s30  }
 0x24a PF: > { %s599_s6 = sand.u32 1, %s934_s12   ;;  %p1272_p1 = scmp.ne.s32.totalorder %s1261_s19, 0 }
 0x24b   : > { %p1273_p2 = scmp.ge.s32.totalorder %s946_s15, 2  ;;  %s600_s18 = scalar_lea.sflag [#allocation5], %s599_s6 }
 0x24d   : > { %p733_p6 = pnand %p1273_p2, %p1272_p1 }
 0x24f   : > { %p734_p12 = pneg %p733_p6 }
 0x251   : > { %929 = dma.done.wait (%p734_p12), %s600_s18, 512  }
 0x252   : > { %931 = vsyncadd (%p734_p12), %s600_s18, 4294966784  ;;  %p17_p3 = scmp.ge.s32.totalorder %s1063_s9, 4   ;;  %s1274_s12 = smov %s938_s13 }
 0x253   : > { %s1275_s13 = smov %s942_s14  ;;  %s1276_s14 = smov %s1072_s17 }
 0x254   : > { %s1277_s15 = smov %s1063_s9  ;;  %19 = sbr.rel (!%p17_p3) target bundleno = 6 (0x6), region = 86 }
 0x259   :  { %605 = vsyncpa [#allocation4], 1 }
 0x25a   :  { %607 = vsyncpa [#allocation4 + $0x1], 1 }
 0x25b   :  { %608 = vsyncpa [#allocation7], 1 }
 0x25c   :  { %609 = vsyncpa [#allocation5], 1 }
 0x25d   :  { %611 = vsyncpa [#allocation5 + $0x1], 1 }

</bundles_post_ra>
